<compile_context>
chip_gen: v7x
topology: tpu7x:2x2x1
jax: 0.10.0
libtpu: 0.0.40
codegen_flags: <defaults>
</compile_context>

<pallas_src>
import functools

import jax
import jax.numpy as jnp
from jax.experimental import pallas as pl
from jax.experimental.pallas import tpu as pltpu


def _round_up(x, m):
    return ((x + m - 1) // m) * m


def gru_cell_kernel(x_ref, h_ref, wx_ref, wh_ru_ref, whh_ref, woh_ref, b_ref,
                    out_ref, *, hp):
    # bf16 operands for the MXU, f32 elsewhere.
    x_bf = x_ref[...].astype(jnp.bfloat16)
    h_f32 = h_ref[...].astype(jnp.float32)
    h_bf = h_ref[...].astype(jnp.bfloat16)
    b = b_ref[...]  # (1, 4*HP) f32, gate order [reset | update | hidden | out]

    # x-contribution of all four gates in one lane-dense matmul, bias folded in.
    gx = jnp.dot(x_bf, wx_ref[...], preferred_element_type=jnp.float32) + b
    # Fused reset/update h-contribution.
    gh = jnp.dot(h_bf, wh_ru_ref[...], preferred_element_type=jnp.float32)

    reset = jax.nn.sigmoid(gx[:, 0 * hp:1 * hp] + gh[:, 0 * hp:1 * hp])
    update = jax.nn.sigmoid(gx[:, 1 * hp:2 * hp] + gh[:, 1 * hp:2 * hp])

    # h_tilde = tanh(in2hidden(cat(x, reset * h)))
    rh_bf = (reset * h_f32).astype(jnp.bfloat16)
    h_tilde = jnp.tanh(
        gx[:, 2 * hp:3 * hp]
        + jnp.dot(rh_bf, whh_ref[...], preferred_element_type=jnp.float32))

    # hidden = (1 - update) * h + update * h_tilde
    hidden = (1.0 - update) * h_f32 + update * h_tilde

    # output = in2out(cat(x, hidden))   (no activation)
    output = (
        gx[:, 3 * hp:4 * hp]
        + jnp.dot(hidden.astype(jnp.bfloat16), woh_ref[...],
                  preferred_element_type=jnp.float32))

    # Single lane-dense output slab: [output | hidden]
    out_ref[:, 0:hp] = output.astype(out_ref.dtype)
    out_ref[:, hp:2 * hp] = hidden.astype(out_ref.dtype)


def pack_gru_params(params, input_size, hidden_size):
    """Pack per-gate (Wx (I,H), Wh (H,H), b (1,H)) f32 params into the fused,
    zero-padded, bf16 layout the kernel expects."""
    H = hidden_size
    HP = _round_up(H, 128)

    def pad_wx(wx):  # (I, H) -> (I, HP)
        return jnp.pad(wx, ((0, 0), (0, HP - H)))

    def pad_wh(wh):  # (H, H) -> (HP, HP)
        return jnp.pad(wh, ((0, HP - H), (0, HP - H)))

    def pad_b(bias):  # (1, H) -> (1, HP)
        return jnp.pad(bias, ((0, 0), (0, HP - H)))

    order = ("reset", "update", "hidden", "out")
    wx_cat = jnp.concatenate([pad_wx(params[g][0]) for g in order],
                             axis=1).astype(jnp.bfloat16)          # (I, 4*HP)
    wh_ru = jnp.concatenate([pad_wh(params[g][1]) for g in ("reset", "update")],
                            axis=1).astype(jnp.bfloat16)           # (HP, 2*HP)
    whh = pad_wh(params["hidden"][1]).astype(jnp.bfloat16)         # (HP, HP)
    woh = pad_wh(params["out"][1]).astype(jnp.bfloat16)            # (HP, HP)
    b_cat = jnp.concatenate([pad_b(params[g][2]) for g in order],
                            axis=1).astype(jnp.float32)            # (1, 4*HP)
    return wx_cat, wh_ru, whh, woh, b_cat


@jax.jit
def custom_gru_forward(x, hidden_state, packed):
    wx_cat, wh_ru, whh, woh, b_cat = packed
    B, I = x.shape
    H = hidden_state.shape[1]
    HP = whh.shape[0]

    # Batch tiling: sublane-aligned, one "parallel" grid axis.
    TB = 256 if B > 256 else _round_up(B, 8)
    B_pad = _round_up(B, TB)

    x_p = jnp.pad(x.astype(jnp.float32), ((0, B_pad - B), (0, 0)))
    h_p = jnp.pad(hidden_state.astype(jnp.float32),
                  ((0, B_pad - B), (0, HP - H)))

    kernel = functools.partial(gru_cell_kernel, hp=HP)

    out_hid = pl.pallas_call(
        kernel,
        out_shape=jax.ShapeDtypeStruct((B_pad, 2 * HP), jnp.float32),
        grid=(B_pad // TB,),
        in_specs=[
            pl.BlockSpec((TB, I), lambda b: (b, 0)),        # x
            pl.BlockSpec((TB, HP), lambda b: (b, 0)),       # h
            pl.BlockSpec((I, 4 * HP), lambda b: (0, 0)),    # Wx_cat (resident)
            pl.BlockSpec((HP, 2 * HP), lambda b: (0, 0)),   # Wh_ru  (resident)
            pl.BlockSpec((HP, HP), lambda b: (0, 0)),       # Whh    (resident)
            pl.BlockSpec((HP, HP), lambda b: (0, 0)),       # Woh    (resident)
            pl.BlockSpec((1, 4 * HP), lambda b: (0, 0)),    # packed bias
        ],
        out_specs=pl.BlockSpec((TB, 2 * HP), lambda b: (b, 0)),
        compiler_params=pltpu.CompilerParams(
            dimension_semantics=("parallel",)),
    )(x_p, h_p, wx_cat, wh_ru, whh, woh, b_cat)

    output = out_hid[:B, 0:H].astype(x.dtype)
    hidden = out_hid[:B, HP:HP + H].astype(x.dtype)
    return output, hidden


def init_linear_params(key, input_size, hidden_size):
    """Deterministic init matching nn.Linear(I+H, H) shapes, split + transposed."""
    kw, kb = jax.random.split(key)
    fan_in = input_size + hidden_size
    bound = 1.0 / jnp.sqrt(fan_in)
    w = jax.random.uniform(kw, (hidden_size, fan_in), jnp.float32, -bound, bound)
    b = jax.random.uniform(kb, (hidden_size,), jnp.float32, -bound, bound)
    wx = w[:, :input_size].T            # (I, H)
    wh = w[:, input_size:].T            # (H, H)
    return wx, wh, b.reshape(1, hidden_size)


def reference_forward(x, h, params):
    def lin(p, a, b):
        wx, wh, bias = p
        return a @ wx + b @ wh + bias
    reset = jax.nn.sigmoid(lin(params["reset"], x, h))
    update = jax.nn.sigmoid(lin(params["update"], x, h))
    h_tilde = jnp.tanh(lin(params["hidden"], x, reset * h))
    hidden = (1.0 - update) * h + update * h_tilde
    output = lin(params["out"], x, hidden)
    return output, hidden


if __name__ == "__main__":
    B, I, H = 2, 16, 32  # batch, input_size, hidden_size (output_size unused by forward)

    key = jax.random.PRNGKey(0)
    k_x, k_h, k_r, k_u, k_hd, k_o = jax.random.split(key, 6)

    x = jax.random.normal(k_x, (B, I), jnp.float32)
    hidden_state = jax.random.normal(k_h, (B, H), jnp.float32)

    params = {
        "reset": init_linear_params(k_r, I, H),
        "update": init_linear_params(k_u, I, H),
        "hidden": init_linear_params(k_hd, I, H),
        "out": init_linear_params(k_o, I, H),
    }
    packed = pack_gru_params(params, I, H)

    out, hidden = custom_gru_forward(x, hidden_state, packed)
    out = jax.block_until_ready(out)
    hidden = jax.block_until_ready(hidden)

    ref_out, ref_hidden = reference_forward(x, hidden_state, params)
    # bf16 MXU operands -> tolerance loosened vs. the pure-f32 reference.
    assert jnp.allclose(out, ref_out, atol=2e-2, rtol=2e-2)
    assert jnp.allclose(hidden, ref_hidden, atol=2e-2, rtol=2e-2)

    print("KERNEL_OK")
</pallas_src>

<mosaic_0001>
module attributes {stable_mosaic.version = 11 : i64} {
  func.func @gru_cell_kernel(%arg0: i32, %arg1: memref<8x16xf32, #tpu.memory_space<vmem>>, %arg2: memref<8x128xf32, #tpu.memory_space<vmem>>, %arg3: memref<16x512xbf16, #tpu.memory_space<vmem>>, %arg4: memref<128x256xbf16, #tpu.memory_space<vmem>>, %arg5: memref<128x128xbf16, #tpu.memory_space<vmem>>, %arg6: memref<128x128xbf16, #tpu.memory_space<vmem>>, %arg7: memref<1x512xf32, #tpu.memory_space<vmem>>, %arg8: memref<8x256xf32, #tpu.memory_space<vmem>>) attributes {dimension_semantics = [#tpu.dimension_semantics<parallel>], iteration_bounds = array<i64: 1>, scalar_prefetch = 0 : i64, scratch_operands = 0 : i64, tpu.core_type = #tpu.core_type<tc>, window_params = [{transform_indices = @transform_0, window_bounds = array<i64: 8, 16>}, {transform_indices = @transform_1, window_bounds = array<i64: 8, 128>}, {pipeline_mode = #tpu.pipeline_mode<synchronous>, transform_indices = @transform_2, window_bounds = array<i64: 16, 512>}, {pipeline_mode = #tpu.pipeline_mode<synchronous>, transform_indices = @transform_3, window_bounds = array<i64: 128, 256>}, {pipeline_mode = #tpu.pipeline_mode<synchronous>, transform_indices = @transform_4, window_bounds = array<i64: 128, 128>}, {pipeline_mode = #tpu.pipeline_mode<synchronous>, transform_indices = @transform_5, window_bounds = array<i64: 128, 128>}, {pipeline_mode = #tpu.pipeline_mode<synchronous>, transform_indices = @transform_6, window_bounds = array<i64: 1, 512>}, {transform_indices = @transform_7, window_bounds = array<i64: 8, 256>}]} {
    %c0 = arith.constant 0 : index
    %c0_0 = arith.constant 0 : index
    %0 = vector.load %arg1[%c0, %c0_0] : memref<8x16xf32, #tpu.memory_space<vmem>>, vector<8x16xf32>
    %1 = arith.truncf %0 : vector<8x16xf32> to vector<8x16xbf16>
    %c0_1 = arith.constant 0 : index
    %c0_2 = arith.constant 0 : index
    %2 = vector.load %arg2[%c0_1, %c0_2] : memref<8x128xf32, #tpu.memory_space<vmem>>, vector<8x128xf32>
    %c0_3 = arith.constant 0 : index
    %c0_4 = arith.constant 0 : index
    %3 = vector.load %arg2[%c0_3, %c0_4] : memref<8x128xf32, #tpu.memory_space<vmem>>, vector<8x128xf32>
    %4 = arith.truncf %3 : vector<8x128xf32> to vector<8x128xbf16>
    %c0_5 = arith.constant 0 : index
    %c0_6 = arith.constant 0 : index
    %5 = vector.load %arg7[%c0_5, %c0_6] : memref<1x512xf32, #tpu.memory_space<vmem>>, vector<1x512xf32>
    %c0_7 = arith.constant 0 : index
    %c0_8 = arith.constant 0 : index
    %6 = vector.load %arg3[%c0_7, %c0_8] : memref<16x512xbf16, #tpu.memory_space<vmem>>, vector<16x512xbf16>
    %cst = arith.constant dense<0.000000e+00> : vector<8x512xf32>
    %7 = tpu.matmul %1, %6, %cst {dimension_numbers = #tpu.dot_dimension_numbers<[1], [0], [0], [1], [0, 0, 1, 1], [], []>} : vector<8x16xbf16>, vector<16x512xbf16>, vector<8x512xf32> -> vector<8x512xf32>
    %8 = vector.broadcast %5 : vector<1x512xf32> to vector<8x512xf32>
    %9 = arith.addf %7, %8 : vector<8x512xf32>
    %c0_9 = arith.constant 0 : index
    %c0_10 = arith.constant 0 : index
    %10 = vector.load %arg4[%c0_9, %c0_10] : memref<128x256xbf16, #tpu.memory_space<vmem>>, vector<128x256xbf16>
    %cst_11 = arith.constant dense<0.000000e+00> : vector<8x256xf32>
    %11 = tpu.matmul %4, %10, %cst_11 {dimension_numbers = #tpu.dot_dimension_numbers<[1], [0], [0], [1], [0, 0, 1, 1], [], []>} : vector<8x128xbf16>, vector<128x256xbf16>, vector<8x256xf32> -> vector<8x256xf32>
    %12 = vector.extract_strided_slice %9 {offsets = [0, 0], sizes = [8, 128], strides = [1, 1]} : vector<8x512xf32> to vector<8x128xf32>
    %13 = vector.extract_strided_slice %11 {offsets = [0, 0], sizes = [8, 128], strides = [1, 1]} : vector<8x256xf32> to vector<8x128xf32>
    %14 = arith.addf %12, %13 : vector<8x128xf32>
    %15 = arith.negf %14 : vector<8x128xf32>
    %16 = math.exp %15 : vector<8x128xf32>
    %cst_12 = arith.constant 1.000000e+00 : f32
    %17 = vector.broadcast %cst_12 : f32 to vector<8x128xf32>
    %18 = arith.addf %17, %16 : vector<8x128xf32>
    %19 = arith.divf %17, %18 : vector<8x128xf32>
    %20 = vector.extract_strided_slice %9 {offsets = [0, 128], sizes = [8, 128], strides = [1, 1]} : vector<8x512xf32> to vector<8x128xf32>
    %21 = vector.extract_strided_slice %11 {offsets = [0, 128], sizes = [8, 128], strides = [1, 1]} : vector<8x256xf32> to vector<8x128xf32>
    %22 = arith.addf %20, %21 : vector<8x128xf32>
    %23 = arith.negf %22 : vector<8x128xf32>
    %24 = math.exp %23 : vector<8x128xf32>
    %cst_13 = arith.constant 1.000000e+00 : f32
    %25 = vector.broadcast %cst_13 : f32 to vector<8x128xf32>
    %26 = arith.addf %25, %24 : vector<8x128xf32>
    %27 = arith.divf %25, %26 : vector<8x128xf32>
    %28 = arith.mulf %19, %2 : vector<8x128xf32>
    %29 = arith.truncf %28 : vector<8x128xf32> to vector<8x128xbf16>
    %30 = vector.extract_strided_slice %9 {offsets = [0, 256], sizes = [8, 128], strides = [1, 1]} : vector<8x512xf32> to vector<8x128xf32>
    %c0_14 = arith.constant 0 : index
    %c0_15 = arith.constant 0 : index
    %31 = vector.load %arg5[%c0_14, %c0_15] : memref<128x128xbf16, #tpu.memory_space<vmem>>, vector<128x128xbf16>
    %cst_16 = arith.constant dense<0.000000e+00> : vector<8x128xf32>
    %32 = tpu.matmul %29, %31, %cst_16 {dimension_numbers = #tpu.dot_dimension_numbers<[1], [0], [0], [1], [0, 0, 1, 1], [], []>} : vector<8x128xbf16>, vector<128x128xbf16>, vector<8x128xf32> -> vector<8x128xf32>
    %33 = arith.addf %30, %32 : vector<8x128xf32>
    %34 = math.tanh %33 : vector<8x128xf32>
    %cst_17 = arith.constant 1.000000e+00 : f32
    %35 = vector.broadcast %cst_17 : f32 to vector<8x128xf32>
    %36 = arith.subf %35, %27 : vector<8x128xf32>
    %37 = arith.mulf %36, %2 : vector<8x128xf32>
    %38 = arith.mulf %27, %34 : vector<8x128xf32>
    %39 = arith.addf %37, %38 : vector<8x128xf32>
    %40 = vector.extract_strided_slice %9 {offsets = [0, 384], sizes = [8, 128], strides = [1, 1]} : vector<8x512xf32> to vector<8x128xf32>
    %41 = arith.truncf %39 : vector<8x128xf32> to vector<8x128xbf16>
    %c0_18 = arith.constant 0 : index
    %c0_19 = arith.constant 0 : index
    %42 = vector.load %arg6[%c0_18, %c0_19] : memref<128x128xbf16, #tpu.memory_space<vmem>>, vector<128x128xbf16>
    %cst_20 = arith.constant dense<0.000000e+00> : vector<8x128xf32>
    %43 = tpu.matmul %41, %42, %cst_20 {dimension_numbers = #tpu.dot_dimension_numbers<[1], [0], [0], [1], [0, 0, 1, 1], [], []>} : vector<8x128xbf16>, vector<128x128xbf16>, vector<8x128xf32> -> vector<8x128xf32>
    %44 = arith.addf %40, %43 : vector<8x128xf32>
    %c0_21 = arith.constant 0 : index
    %c0_22 = arith.constant 0 : index
    %45 = vector.load %arg8[%c0_21, %c0_22] : memref<8x256xf32, #tpu.memory_space<vmem>>, vector<8x128xf32>
    tpu.vector_store %arg8[%c0_21, %c0_22], %44 {strides = array<i32>} : memref<8x256xf32, #tpu.memory_space<vmem>>, vector<8x128xf32>,
    %c0_23 = arith.constant 0 : index
    %c128 = arith.constant 128 : index
    %46 = vector.load %arg8[%c0_23, %c128] : memref<8x256xf32, #tpu.memory_space<vmem>>, vector<8x128xf32>
    tpu.vector_store %arg8[%c0_23, %c128], %39 {strides = array<i32>} : memref<8x256xf32, #tpu.memory_space<vmem>>, vector<8x128xf32>,
    return
  }
  func.func @transform_0(%arg0: i32) -> (i32, i32) {
    %c0_i32 = arith.constant 0 : i32
    %c0_i32_0 = arith.constant 0 : i32
    return %arg0, %c0_i32 : i32, i32
  }
  func.func @transform_1(%arg0: i32) -> (i32, i32) {
    %c0_i32 = arith.constant 0 : i32
    %c0_i32_0 = arith.constant 0 : i32
    return %arg0, %c0_i32 : i32, i32
  }
  func.func @transform_2(%arg0: i32) -> (i32, i32) {
    %c0_i32 = arith.constant 0 : i32
    %c0_i32_0 = arith.constant 0 : i32
    %c0_i32_1 = arith.constant 0 : i32
    return %c0_i32, %c0_i32_0 : i32, i32
  }
  func.func @transform_3(%arg0: i32) -> (i32, i32) {
    %c0_i32 = arith.constant 0 : i32
    %c0_i32_0 = arith.constant 0 : i32
    %c0_i32_1 = arith.constant 0 : i32
    return %c0_i32, %c0_i32_0 : i32, i32
  }
  func.func @transform_4(%arg0: i32) -> (i32, i32) {
    %c0_i32 = arith.constant 0 : i32
    %c0_i32_0 = arith.constant 0 : i32
    %c0_i32_1 = arith.constant 0 : i32
    return %c0_i32, %c0_i32_0 : i32, i32
  }
  func.func @transform_5(%arg0: i32) -> (i32, i32) {
    %c0_i32 = arith.constant 0 : i32
    %c0_i32_0 = arith.constant 0 : i32
    %c0_i32_1 = arith.constant 0 : i32
    return %c0_i32, %c0_i32_0 : i32, i32
  }
  func.func @transform_6(%arg0: i32) -> (i32, i32) {
    %c0_i32 = arith.constant 0 : i32
    %c0_i32_0 = arith.constant 0 : i32
    %c0_i32_1 = arith.constant 0 : i32
    return %c0_i32, %c0_i32_0 : i32, i32
  }
  func.func @transform_7(%arg0: i32) -> (i32, i32) {
    %c0_i32 = arith.constant 0 : i32
    %c0_i32_0 = arith.constant 0 : i32
    return %arg0, %c0_i32 : i32, i32
  }
}

</mosaic_0001>

<bundles_post_ra>
// kernel: custom_gru_forward.1
= control target key start
LH: loop header
LB: loop body
LE: loop exit
PB: predicated region body
PF: predicated region fallthrough
CT: control target
= control target key end

     0   :  { %12 = vsyncpa [#allocation3], 0  ;;  %s1012_s0 = inlined_call_operand.vmem [shape: f32[8,16], index: 0, kind: input, shape index: {}]   ;;  %s1013_s1 = inlined_call_operand.vmem [shape: f32[8,128], index: 1, kind: input, shape index: {}]   ;;  %s1014_s2 = inlined_call_operand.hbm [shape: bf16[16,512], index: 2, kind: input, shape index: {}]   ;;  %s1015_s3 = inlined_call_operand.hbm [shape: bf16[128,256], index: 3, kind: input, shape index: {}]   ;;  %s1016_s4 = inlined_call_operand.hbm [shape: bf16[128,128], index: 4, kind: input, shape index: {}]   ;;  %s1017_s5 = inlined_call_operand.hbm [shape: bf16[128,128], index: 5, kind: input, shape index: {}]   ;;  %s1018_s6 = inlined_call_operand.vmem [shape: f32[1,512], index: 6, kind: input, shape index: {}]   ;;  %s1019_s7 = inlined_call_operand.vmem [shape: f32[8,256], index: 7, kind: output, shape index: {}]  }
   0x1   :  { %13 = vsyncpa [#allocation5], 0 }
   0x2   :  { %14 = vsyncpa [#allocation8], 0  ;;  %s861_s24 = smov [#allocation4]   ;;  %s767_s28 = scalar_lea.hbm %s1015_s3, 2048 }
   0x3   :  { %s36_s25 = sshll.u32 %s861_s24, 4  ;;  %p768_p0 = scmp.ne.s32.totalorder %s1015_s3, %s767_s28  ;;  %s37_s25 = int_to_ptr.vmem [resolvable:$true] %s36_s25 }
   0x4   :  { %p771_p1 = scmp.lt.u32.totalorder %s767_s28, %s1015_s3 }
   0x6   :  { %p773_p2 = pnand %p771_p1, %p768_p0 }
   0x8   :  { %776 = shalt.err (!%p773_p2)
}
   0x9   :  { %s777_s10 = scalar_lea.vmem %s37_s25, 2048  ;;  %p782_p4 = scmp.lt.s32.totalorder %s37_s25, %s37_s25 }
   0xa   :  { %p778_p3 = scmp.ne.s32.totalorder %s37_s25, %s777_s10  ;;  %p783_p5 = scmp.lt.s32.totalorder %s777_s10, %s777_s10 }
   0xc   :  { %p784_p6 = por %p783_p5, %p782_p4 }
   0xe   :  { %p785_p7 = pnand %p784_p6, %p778_p3 }
  0x10   :  { %788 = shalt.err (!%p785_p7)
}
  0x11   :  { %s862_s11 = smov 128   ;;  %s863_s12 = smov 8  }
  0x12   :  { %42 = dma.hbm_to_vmem [thread:$0]  %s1015_s3, 2048, %s37_s25, [#allocation5], %s862_s11, %s862_s11, %s863_s12  }
  0x13   :  { %s864_s15 = smov [#allocation2]   ;;  %s789_s19 = scalar_lea.hbm %s1014_s2, 512 }
  0x14   :  { %s24_s16 = sshll.u32 %s864_s15, 4  ;;  %p790_p8 = scmp.ne.s32.totalorder %s1014_s2, %s789_s19  ;;  %s25_s16 = int_to_ptr.vmem [resolvable:$true] %s24_s16 }
  0x15   :  { %p793_p9 = scmp.lt.u32.totalorder %s789_s19, %s1014_s2 }
  0x17   :  { %p795_p10 = pnand %p793_p9, %p790_p8 }
  0x19   :  { %798 = shalt.err (!%p795_p10)
}
  0x1a   :  { %s799_s24 = scalar_lea.vmem %s25_s16, 512  ;;  %p804_p12 = scmp.lt.s32.totalorder %s25_s16, %s25_s16 }
  0x1b   :  { %p800_p11 = scmp.ne.s32.totalorder %s25_s16, %s799_s24  ;;  %p805_p13 = scmp.lt.s32.totalorder %s799_s24, %s799_s24 }
  0x1d   :  { %p806_p0 = por %p805_p13, %p804_p12 }
  0x1f   :  { %p807_p1 = pnand %p806_p0, %p800_p11 }
  0x21   :  { %810 = shalt.err (!%p807_p1)
}
  0x22   :  { %s865_s3 = smov 256   ;;  %s866_s25 = smov 16  }
  0x23   :  { %30 = dma.hbm_to_vmem [thread:$0]  %s1014_s2, 512, %s25_s16, [#allocation3], %s865_s3, %s865_s3, %s866_s25  }
  0x24   :  { %s867_s28 = smov [#allocation6]   ;;  %s811_s9 = scalar_lea.hbm %s1016_s4, 1024 }
  0x25   :  { %s48_s29 = sshll.u32 %s867_s28, 4  ;;  %p812_p2 = scmp.ne.s32.totalorder %s1016_s4, %s811_s9  ;;  %s49_s29 = int_to_ptr.vmem [resolvable:$true] %s48_s29 }
  0x26   :  { %p815_p3 = scmp.lt.u32.totalorder %s811_s9, %s1016_s4 }
  0x28   :  { %p817_p4 = pnand %p815_p3, %p812_p2 }
  0x2a   :  { %820 = shalt.err (!%p817_p4)
}
  0x2b   :  { %s821_s14 = scalar_lea.vmem %s49_s29, 1024  ;;  %p826_p6 = scmp.lt.s32.totalorder %s49_s29, %s49_s29 }
  0x2c   :  { %p822_p5 = scmp.ne.s32.totalorder %s49_s29, %s821_s14  ;;  %p827_p7 = scmp.lt.s32.totalorder %s821_s14, %s821_s14 }
  0x2e   :  { %p828_p8 = por %p827_p7, %p826_p6 }
  0x30   :  { %p829_p9 = pnand %p828_p8, %p822_p5 }
  0x32   :  { %832 = shalt.err (!%p829_p9)
}
  0x33   :  { %s868_s2 = smov 64   ;;  %s869_s15 = smov 4  }
  0x34   :  { %54 = dma.hbm_to_vmem [thread:$0]  %s1016_s4, 1024, %s49_s29, [#allocation5], %s868_s2, %s868_s2, %s869_s15  }
  0x35   :  { %s870_s18 = smov [#allocation7]   ;;  %s833_s22 = scalar_lea.hbm %s1017_s5, 1024 }
  0x36   :  { %s60_s19 = sshll.u32 %s870_s18, 4  ;;  %p834_p10 = scmp.ne.s32.totalorder %s1017_s5, %s833_s22  ;;  %s61_s19 = int_to_ptr.vmem [resolvable:$true] %s60_s19 }
  0x37   :  { %p837_p11 = scmp.lt.u32.totalorder %s833_s22, %s1017_s5 }
  0x39   :  { %p839_p12 = pnand %p837_p11, %p834_p10 }
  0x3b   :  { %842 = shalt.err (!%p839_p12)
}
  0x3c   :  { %s843_s26 = scalar_lea.vmem %s61_s19, 1024  ;;  %p848_p0 = scmp.lt.s32.totalorder %s61_s19, %s61_s19 }
  0x3d   :  { %p844_p13 = scmp.ne.s32.totalorder %s61_s19, %s843_s26  ;;  %p849_p1 = scmp.lt.s32.totalorder %s843_s26, %s843_s26 }
  0x3f   :  { %p850_p2 = por %p849_p1, %p848_p0 }
  0x41   :  { %p851_p3 = pnand %p850_p2, %p844_p13 }
  0x43   :  { %854 = shalt.err (!%p851_p3)
}
  0x44   :  { %66 = dma.hbm_to_vmem [thread:$0]  %s1017_s5, 1024, %s61_s19, [#allocation8], %s868_s2, %s868_s2, %s869_s15  }
  0x45   :  { %855 = dma.done.wait [#allocation3], 512  }
  0x46   :  { %856 = vsyncadd [#allocation3], 4294966784 }
  0x47   :  { %857 = dma.done.wait [#allocation5], 3072  }
  0x48   :  { %858 = vsyncadd [#allocation5], 4294964224 }
  0x49   :  { %859 = dma.done.wait [#allocation8], 1024  }
  0x4a   :  { %860 = vsyncadd [#allocation8], 4294966272  ;;  %v871_v0 = vmov 0   ;;  %v711_v1 = vld [vmem:[#allocation4 + $0x4] ss:$8 sps:$4 sm:$0xff]   ;;  %v82_v10 = vld [vmem:[%s1012_s0] sm:$0xff]  ;;  %v92_v38 = vlaneseq }
  0x4b   :  { %168 = vmatprep.mubr.bf16.mxu1 %v871_v0  ;;  %346 = vmatprep.mubr.bf16.mxu0 %v871_v0  ;;  %v713_v2 = vld [vmem:[#allocation4] ss:$8 sps:$4 sm:$0xff]   ;;  %v714_v3 = vld [vmem:[#allocation4 + $0x14] ss:$8 sps:$4 sm:$0xff]   ;;  %v716_v4 = vld [vmem:[#allocation4 + $0x10] ss:$8 sps:$4 sm:$0xff]   ;;  %v83_v12 = vpack.c.bf16 %v82_v10, %v82_v10 }
  0x4c   :  { %314 = vmatprep.subr.bf16.mxu0 %v711_v1  ;;  %v717_v5 = vld [vmem:[#allocation4 + $0x24] ss:$8 sps:$4 sm:$0xff]   ;;  %v719_v6 = vld [vmem:[#allocation4 + $0x20] ss:$8 sps:$4 sm:$0xff]   ;;  %v720_v7 = vld [vmem:[#allocation4 + $0x34] ss:$8 sps:$4 sm:$0xff]  }
  0x4d   :  { %315 = vmatpush1.bf16.msra.mxu0 %v713_v2  ;;  %v729_v8 = vld [vmem:[#allocation2 + $0x4] ss:$16 sps:$4 sm:$0xff]   ;;  %v731_v9 = vld [vmem:[#allocation2] ss:$16 sps:$4 sm:$0xff]   ;;  %vm132_vm0 = vcmask 130048   ;;  %v970_v23 = vld [vmem:[%s1013_s1] sm:$0xff] }
  0x4e   :  { %316 = vmatprep.subr.bf16.mxu0 %v714_v3  ;;  %136 = vmatprep.subr.bf16.mxu1 %v729_v8  ;;  %v722_v11 = vld [vmem:[#allocation4 + $0x30] ss:$8 sps:$4 sm:$0xff]   ;;  %v723_v13 = vld [vmem:[#allocation4 + $0x44] ss:$8 sps:$4 sm:$0xff]   ;;  %v725_v14 = vld [vmem:[#allocation4 + $0x40] ss:$8 sps:$4 sm:$0xff]   ;;  %v85_v24 = vpack.c.bf16 %v970_v23, %v970_v23 }
  0x4f   :  { %137 = vmatpush1.bf16.msra.mxu1 %v731_v9  ;;  %v738_v15 = vld [vmem:[#allocation2 + $0x8] ss:$16 sps:$4 sm:$0xff]   ;;  %v740_v16 = vld [vmem:[#allocation2 + $0xc] ss:$16 sps:$4 sm:$0xff]   ;;  %v741_v25 = vld [vmem:[#allocation6] sm:$0xff]   ;;  %v872_v26 = vmov 0.0  }
  0x50   :  { %v726_v17 = vld [vmem:[#allocation4 + $0x54] ss:$8 sps:$4 sm:$0xff]   ;;  %177 = vmatprep.subr.bf16.mxu1 %v740_v16  ;;  %v728_v18 = vld [vmem:[#allocation4 + $0x50] ss:$8 sps:$4 sm:$0xff]   ;;  %v732_v19 = vld [vmem:[#allocation4 + $0x64] ss:$8 sps:$4 sm:$0xff]  }
  0x51   :  { %317 = vmatpush1.bf16.msra.mxu0 %v716_v4  ;;  %v734_v20 = vld [vmem:[#allocation4 + $0x60] ss:$8 sps:$4 sm:$0xff]   ;;  %v735_v21 = vld [vmem:[#allocation4 + $0x74] ss:$8 sps:$4 sm:$0xff]   ;;  %v737_v22 = vld [vmem:[#allocation4 + $0x70] ss:$8 sps:$4 sm:$0xff]  }
  0x52   :  { %318 = vmatprep.subr.bf16.mxu0 %v717_v5  ;;  %600 = vmatmul.mubr.msk.bf16.vlgmr.msra.gmra.mrb[0].mxu1 %vm132_vm0, %v83_v12  ;;  %v742_v27 = vld [vmem:[#allocation6 + $0x8] sm:$0xff]   ;;  %v743_v28 = vld [vmem:[#allocation6 + $0x10] sm:$0xff]   ;;  %v744_v29 = vld [vmem:[#allocation6 + $0x18] sm:$0xff]   ;;  %vm873_vm1 = vmmov 0   ;;  %v988_v42 = vshrl.u32 %v92_v38, 7 }
  0x53   :  { %178 = vmatpush1.bf16.msra.mxu1 %v738_v15  ;;  %209 = vmatprep.mubr.bf16.mxu1 %v871_v0  ;;  %v745_v30 = vld [vmem:[#allocation6 + $0x20] sm:$0xff]   ;;  %v746_v31 = vld [vmem:[#allocation6 + $0x28] sm:$0xff]   ;;  %v747_v32 = vld [vmem:[#allocation6 + $0x30] sm:$0xff]  }
  0x54   :  { %654 = vmatprep.subr.bf16.mxu1 %v872_v26  ;;  %v748_v33 = vld [vmem:[#allocation6 + $0x38] sm:$0xff]   ;;  %v749_v34 = vld [vmem:[#allocation7] sm:$0xff]   ;;  %v750_v35 = vld [vmem:[#allocation7 + $0x8] sm:$0xff]   ;;  %v94_v44 = vsub.s32 0, %v988_v42  ;;  %v98_v47 = vsub.s32 1, %v988_v42  ;;  %v102_v9 = vsub.s32 2, %v988_v42 }
  0x55   :  { %319 = vmatpush1.bf16.msra.mxu0 %v719_v6  ;;  %v751_v36 = vld [vmem:[#allocation7 + $0x10] sm:$0xff]   ;;  %v86_v46 = vld [vmem:[%s1018_s6] sm:$0xf]  ;;  %v753_v3 = vld [vmem:[#allocation7 + $0x20] sm:$0xff]  }
  0x56   :  { %320 = vmatprep.subr.bf16.mxu0 %v720_v7  ;;  %v95_v50 = vrot.slane %v86_v46, %v94_v44  ;;  %v99_v51 = vrot.slane %v86_v46, %v98_v47  ;;  %v752_v2 = vld [vmem:[#allocation7 + $0x18] sm:$0xff]   ;;  %v754_v4 = vld [vmem:[#allocation7 + $0x28] sm:$0xff]   ;;  %v755_v5 = vld [vmem:[#allocation7 + $0x30] sm:$0xff]  }
  0x57   :  { %v756_v6 = vld [vmem:[#allocation7 + $0x38] sm:$0xff]  }
  0x59   :  { %321 = vmatpush1.bf16.msra.mxu0 %v722_v11  ;;  %v103_v11 = vrot.slane %v86_v46, %v102_v9 }
  0x5a   :  { %322 = vmatprep.subr.bf16.mxu0 %v723_v13  ;;  %601 = vmatmul.mubr.msk.bf16.vlgmr.msra.gmra.mrb[4].mxu1 %vm132_vm0, %v83_v12 }
  0x5b   :  { %655 = vmatpush3.bf16.msra.mxu1 %v741_v25  ;;  %670 = vmatprep.mubr.msk.bf16.mxu1 %vm873_vm1, %v872_v26 }
  0x5c   :  { %656 = vmatprep.subr.bf16.mxu1 %v872_v26 }
  0x5d   :  { %323 = vmatpush1.bf16.msra.mxu0 %v725_v14 }
  0x5e   :  { %324 = vmatprep.subr.bf16.mxu0 %v726_v17 }
  0x5f   :  { %657 = vmatpush3.bf16.msra.mxu1 %v742_v27 }
  0x60   :  { %658 = vmatprep.subr.bf16.mxu1 %v872_v26 }
  0x61   :  { %325 = vmatpush1.bf16.msra.mxu0 %v728_v18 }
  0x62   :  { %326 = vmatprep.subr.bf16.mxu0 %v732_v19 }
  0x63   :  { %659 = vmatpush3.bf16.msra.mxu1 %v743_v28 }
  0x64   :  { %660 = vmatprep.subr.bf16.mxu1 %v872_v26 }
  0x65   :  { %327 = vmatpush1.bf16.msra.mxu0 %v734_v20 }
  0x66   :  { %328 = vmatprep.subr.bf16.mxu0 %v735_v21 }
  0x67   :  { %661 = vmatpush3.bf16.msra.mxu1 %v744_v29 }
  0x68   :  { %662 = vmatprep.subr.bf16.mxu1 %v872_v26 }
  0x69   :  { %329 = vmatpush1.bf16.msra.mxu0 %v737_v22 }
  0x6a   :  { %674 = vmatprep.subr.bf16.mxu0 %v872_v26 }
  0x6b   :  { %663 = vmatpush3.bf16.msra.mxu1 %v745_v30 }
  0x6c   :  { %347 = vmatmul.mubr.bf16.vlgmr.msra.gmra.mrb[0].mxu0 %v85_v24  ;;  %664 = vmatprep.subr.bf16.mxu1 %v872_v26 }
  0x6d   :  { %690 = vmatprep.mubr.msk.bf16.mxu0 %vm873_vm1, %v872_v26  ;;  %675 = vmatpush3.bf16.msra.mxu0 %v749_v34 }
  0x6e   :  { %676 = vmatprep.subr.bf16.mxu0 %v872_v26 }
  0x6f   :  { %665 = vmatpush3.bf16.msra.mxu1 %v746_v31 }
  0x70   :  { %666 = vmatprep.subr.bf16.mxu1 %v872_v26 }
  0x71   :  { %677 = vmatpush3.bf16.msra.mxu0 %v750_v35 }
  0x72   :  { %678 = vmatprep.subr.bf16.mxu0 %v872_v26 }
  0x73   :  { %667 = vmatpush3.bf16.msra.mxu1 %v747_v32 }
  0x74   :  { %668 = vmatprep.subr.bf16.mxu1 %v872_v26 }
  0x75   :  { %679 = vmatpush3.bf16.msra.mxu0 %v751_v36 }
  0x76   :  { %680 = vmatprep.subr.bf16.mxu0 %v872_v26 }
  0x77   :  { %669 = vmatpush3.bf16.msra.mxu1 %v748_v33 }
  0x79   :  { %681 = vmatpush3.bf16.msra.mxu0 %v752_v2 }
  0x7a   :  { %682 = vmatprep.subr.bf16.mxu0 %v872_v26 }
  0x7d   :  { %683 = vmatpush3.bf16.msra.mxu0 %v753_v3 }
  0x7e   :  { %684 = vmatprep.subr.bf16.mxu0 %v872_v26 }
  0x81   :  { %685 = vmatpush3.bf16.msra.mxu0 %v754_v4 }
  0x82   :  { %686 = vmatprep.subr.bf16.mxu0 %v872_v26 }
  0x85   :  { %687 = vmatpush3.bf16.msra.mxu0 %v755_v5 }
  0x86   :  { %688 = vmatprep.subr.bf16.mxu0 %v872_v26  ;;  %v106_v26 = vsub.s32 3, %v988_v42 }
  0x88   :  { %v107_v27 = vrot.slane %v86_v46, %v106_v26 }
  0x89   :  { %689 = vmatpush3.bf16.msra.mxu0 %v756_v6 }
 0x125   :  { %v170_v37 = vpop.f32.mrb[0].mxu1 }
 0x126   :  { %v172_v39 = vpop.f32.mrb[1].mxu1  ;;  %v171_v52 = vadd.f32 %v170_v37, %v95_v50 }
 0x127   :  { %v174_v40 = vpop.f32.mrb[2].mxu1  ;;  %v173_v53 = vadd.f32 %v172_v39, %v99_v51 }
 0x128   :  { %v175_v41 = vpop.f32.mrb[3].mxu1 }
 0x12d   :  { %v211_v43 = vpop.f32.mrb[4].mxu1 }
 0x12e   :  { %v991_v45 = vpop.f32.mrb[5].mxu1  ;;  %v212_v12 = vadd.f32 %v211_v43, %v103_v11 }
 0x12f   :  { %v215_v48 = vpop.f32.mrb[6].mxu1  ;;  %v214_v28 = vadd.f32 %v991_v45, %v107_v27 }
 0x130   :  { %v216_v49 = vpop.f32.mrb[7].mxu1 }
 0x13f   :  { %v348_v54 = vpop.f32.mrb[0].mxu0 }
 0x140   :  { %v355_v55 = vadd.f32 %v348_v54, %v171_v52  ;;  %v350_v56 = vpop.f32.mrb[1].mxu0 }
 0x141   :  { %v362_v57 = vadd.f32 %v350_v56, %v173_v53  ;;  %v352_v58 = vpop.f32.mrb[2].mxu0 }
 0x142   :  { %v618_v59 = vmul.f32 -1.442695, %v355_v55  ;;  %v353_v60 = vpop.f32.mrb[3].mxu0 }
 0x143   :  { %v619_v7 = vmul.f32 -1.442695, %v362_v57 }
 0x144   :  { %757 = vpow2.f32 %v618_v59 }
 0x14e   :  { %v758_v61 = vpop.eup %757 }
 0x14f   :  { %v359_v62 = vadd.f32 1.0, %v758_v61 }
 0x151   :  { %759 = vrcp.f32 %v359_v62 }
 0x152   :  { %761 = vpow2.f32 %v619_v7 }
 0x15b   :  { %v760_v63 = vpop.eup %759 }
 0x15c   :  { %v369_v0 = vmul.f32 %v760_v63, %v970_v23  ;;  %v762_v8 = vpop.eup %761 }
 0x15d   :  { %v366_v10 = vadd.f32 1.0, %v762_v8 }
 0x15e   :  { %v370_v1 = vpack.c.bf16 %v369_v0, %v369_v0 }
 0x15f   :  { %763 = vrcp.f32 %v366_v10 }
 0x160   :  { %671 = vmatmul.mubr.bf16.vlgmr.msra.gmra.mrb[8].mxu1 %v370_v1 }
 0x169   :  { %v764_v18 = vpop.eup %763 }
 0x16a   :  { %v477_v19 = vsub.f32 1.0, %v764_v18 }
 0x16c   :  { %v478_v21 = vmul.f32 %v477_v19, %v970_v23 }
 0x233   :  { %v469_v13 = vpop.f32.mrb[8].mxu1 }
 0x234   :  { %v475_v14 = vadd.f32 %v469_v13, %v212_v12  ;;  %v672_v15 = vpop.f32.mrb[9].mxu1 }
 0x235   :  { %v472_v16 = vpop.f32.mrb[10].mxu1 }
 0x236   :  { %765 = vtanh.f32 %v475_v14  ;;  %v673_v17 = vpop.f32.mrb[11].mxu1 }
 0x240   :  { %v766_v20 = vpop.eup %765 }
 0x241   :  { %v479_v22 = vmul.f32 %v766_v20, %v764_v18 }
 0x243   :  { %v480_v24 = vadd.f32 %v479_v22, %v478_v21 }
 0x245   :  { %v481_v25 = vpack.c.bf16 %v480_v24, %v480_v24  ;;  %588 = vst [vmem:[%s1019_s7 + $0x8] sm:$0xff] %v480_v24 }
 0x247   :  { %691 = vmatmul.mubr.bf16.vlgmr.msra.gmra.mrb[4].mxu0 %v481_v25 }
 0x31a   :  { %v580_v29 = vpop.f32.mrb[4].mxu0 }
 0x31b   :  { %v586_v30 = vadd.f32 %v580_v29, %v214_v28  ;;  %v692_v31 = vpop.f32.mrb[5].mxu0 }
 0x31c   :  { %v583_v32 = vpop.f32.mrb[6].mxu0 }
 0x31d   :  { %587 = vst [vmem:[%s1019_s7] sm:$0xff] %v586_v30  ;;  %v693_v23 = vpop.f32.mrb[7].mxu0 }
 0x31e   :  { %593 = vsyncpa [#allocation3], 1 }
 0x31f   :  { %594 = vsyncpa [#allocation5], 1 }
 0x320   :  { %595 = vsyncpa [#allocation8], 1 }

</bundles_post_ra>
